<compile_context>
chip_gen: v7x
topology: tpu7x:2x2x1
jax: 0.10.0
libtpu: 0.0.40
codegen_flags: <defaults>
</compile_context>

<pallas_src>
import jax
import jax.numpy as jnp
from jax.experimental import pallas as pl
from jax.experimental.pallas import tpu as pltpu


# -----------------------------------------------------------------------------
# Fused kernel: encoder + reparameterize (x2) + decoder (x2), weights as slabs
# -----------------------------------------------------------------------------
def _bbvae_kernel(x_ref, eps_ref, wx_ref, wh_ref, wl_ref, wz_ref, b_ref,
                  muvar_ref, rx_ref):
    batch, input_size = x_ref.shape          # static
    z_size = eps_ref.shape[1]
    half = wh_ref.shape[0]
    latent = wz_ref.shape[1]
    z2 = 2 * z_size

    x = x_ref[...]
    b = b_ref[...]                            # (1, nb) packed biases

    # static bias column offsets: [b1|db1 | b2 | bmu|bvar | db2 | db3]
    o = 0
    b1x = b[:, o:o + half + latent]; o += half + latent
    b2 = b[:, o:o + latent];         o += latent
    bmv = b[:, o:o + z2];            o += z2
    db2 = b[:, o:o + half];          o += half
    db3 = b[:, o:o + input_size]

    # ---- encoder L1 + shared x@W1x_full term: ONE MXU push on [w1 | W1x] ----
    h1x = jnp.dot(x, wx_ref[...], preferred_element_type=jnp.float32) + b1x
    h1 = jnp.maximum(h1x[:, :half], 0.0)      # relu(x @ w1 + b1)
    hx = h1x[:, half:]                        # x @ W1x_full + db1 (no ReLU yet)

    # ---- encoder L2 ----
    wh = wh_ref[...]                          # [w2 | dw3]  (half, latent+input)
    h2 = jnp.maximum(
        jnp.dot(h1, wh[:, :latent], preferred_element_type=jnp.float32) + b2,
        0.0)

    # ---- fc_mu ‖ fc_var: ONE MXU push on [wmu | wvar] ----
    wl = wl_ref[...]                          # [wmu|wvar | dw2] (latent, 2z+half)
    muvar = jnp.dot(h2, wl[:, :z2], preferred_element_type=jnp.float32) + bmv
    muvar_ref[...] = muvar

    mu = muvar[:, :z_size]
    std = jnp.exp(0.5 * muvar[:, z_size:])

    # ---- reparameterize + decode: both samples stacked into one (2B, ·) pass --
    eps = eps_ref[...]                        # (2B, z)
    mu2 = jnp.concatenate([mu, mu], axis=0)
    std2 = jnp.concatenate([std, std], axis=0)
    hx2 = jnp.concatenate([hx, hx], axis=0)
    z_both = mu2 + eps * std2                 # z = mu + eps * exp(0.5*logvar)

    hd = jnp.maximum(
        jnp.dot(z_both, wz_ref[...], preferred_element_type=jnp.float32) + hx2,
        0.0)
    hd = jnp.maximum(
        jnp.dot(hd, wl[:, z2:], preferred_element_type=jnp.float32) + db2,
        0.0)
    rx_ref[...] = (
        jnp.dot(hd, wh[:, latent:], preferred_element_type=jnp.float32) + db3)


# -----------------------------------------------------------------------------
# Wrapper: single ungridded pallas_call, whole arrays VMEM-resident
# -----------------------------------------------------------------------------
_VMEM = pl.BlockSpec(memory_space=pltpu.MemorySpace.VMEM)


def bbvae_forward(packed, x, key):
    batch, input_size = x.shape
    z_size = packed["wz"].shape[0]
    latent = packed["wz"].shape[1]
    half = packed["wh"].shape[0]

    # eps for BOTH samples (matches torch.randn_like semantics); vary key/call.
    eps = jax.random.normal(key, (2 * batch, z_size), jnp.float32)

    args = (x, eps, packed["wx"], packed["wh"], packed["wl"], packed["wz"],
            packed["b"])

    out_shape = (jax.ShapeDtypeStruct((batch, 2 * z_size), jnp.float32),
                 jax.ShapeDtypeStruct((2 * batch, input_size), jnp.float32))

    flops = 2 * (batch * input_size * (half + latent)      # fused enc L1 + hx
                 + batch * half * latent                    # enc L2
                 + batch * latent * 2 * z_size              # fused mu|var
                 + 2 * batch * z_size * latent              # dec L1 (stacked)
                 + 2 * batch * latent * half                # dec L2 (stacked)
                 + 2 * batch * half * input_size)           # dec L3 (stacked)
    in_bytes = sum(int(a.size) * a.dtype.itemsize for a in args)
    out_bytes = 4 * (batch * 2 * z_size + 2 * batch * input_size)
    cost = pl.CostEstimate(flops=flops,
                           transcendentals=batch * z_size,   # exp for std
                           bytes_accessed=in_bytes + out_bytes)

    muvar, rx = pl.pallas_call(
        _bbvae_kernel,
        out_shape=out_shape,
        in_specs=[_VMEM] * len(args),
        out_specs=(_VMEM, _VMEM),
        cost_estimate=cost,
    )(*args)

    # free wrapper-side splits
    return {"rx1": rx[:batch],
            "rx2": rx[batch:],
            "mu": muvar[:, :z_size],
            "logvar": muvar[:, z_size:]}


net_forward = jax.jit(bbvae_forward)


# -----------------------------------------------------------------------------
# Parameter init (mirrors nn.Linear's U(-1/sqrt(fan_in), 1/sqrt(fan_in))),
# then packs everything into 5 slabs consumed by the kernel.
# -----------------------------------------------------------------------------
def _init_linear(key, fan_in, fan_out):
    kw, kb = jax.random.split(key)
    bound = 1.0 / jnp.sqrt(jnp.float32(fan_in))
    w = jax.random.uniform(kw, (fan_in, fan_out), jnp.float32, -bound, bound)
    b = jax.random.uniform(kb, (1, fan_out), jnp.float32, -bound, bound)
    return w, b


def init_params(key, input_size, latent_size, z_size, part_idx):
    half = latent_size // 2
    n_part = len(part_idx)
    assert n_part == input_size - 9, "decoder contract: len(part_idx) == input_size - 9"
    keys = jax.random.split(key, 7)

    w1, b1 = _init_linear(keys[0], input_size, half)
    w2, b2 = _init_linear(keys[1], half, latent_size)
    wmu, bmu = _init_linear(keys[2], latent_size, z_size)
    wvar, bvar = _init_linear(keys[3], latent_size, z_size)
    dw1, db1 = _init_linear(keys[4], n_part + z_size, latent_size)  # [z | xpart] rows
    dw2, db2 = _init_linear(keys[5], latent_size, half)
    dw3, db3 = _init_linear(keys[6], half, input_size)

    # decoder input is concat([z, x[:, part_idx]], dim=1): first z_size rows
    # multiply z, remaining rows are scattered to a zero-padded full-width
    # weight so the kernel computes x @ W1x_full directly (gather folded away).
    dw1z = dw1[:z_size]
    dw1x = (jnp.zeros((input_size, latent_size), jnp.float32)
            .at[jnp.asarray(part_idx), :].add(dw1[z_size:]))

    packed = {
        # weights grouped by row count (column-sliced with static offsets in-kernel)
        "wx": jnp.concatenate([w1, dw1x], axis=1),        # (input, half+latent)
        "wh": jnp.concatenate([w2, dw3], axis=1),         # (half, latent+input)
        "wl": jnp.concatenate([wmu, wvar, dw2], axis=1),  # (latent, 2z+half)
        "wz": dw1z,                                       # (z, latent)
        # all biases in one slab: [b1|db1 | b2 | bmu|bvar | db2 | db3]
        "b": jnp.concatenate([b1, db1, b2, bmu, bvar, db2, db3], axis=1),
    }
    return packed


# -----------------------------------------------------------------------------
if __name__ == "__main__":
    input_size = 25
    latent_size = 32
    z_size = 8
    batch = 8
    # part_idx must select input_size - 9 = 16 columns (decoder input contract)
    part_idx = tuple(range(9, input_size))

    key = jax.random.PRNGKey(0)
    kp, kx, keps = jax.random.split(key, 3)
    packed = init_params(kp, input_size, latent_size, z_size, part_idx)
    x = jax.random.normal(kx, (batch, input_size), jnp.float32)

    out = net_forward(packed, x, keps)
    jax.block_until_ready(out)

    assert out["mu"].shape == (batch, z_size)
    assert out["logvar"].shape == (batch, z_size)
    assert out["rx1"].shape == (batch, input_size)
    assert out["rx2"].shape == (batch, input_size)
    for v in out.values():
        assert bool(jnp.all(jnp.isfinite(v)))
    print("KERNEL_OK")
</pallas_src>

<mosaic_0001>
module attributes {stable_mosaic.version = 11 : i64} {
  func.func @_bbvae_kernel(%arg0: memref<8x25xf32, #tpu.memory_space<vmem>>, %arg1: memref<16x8xf32, #tpu.memory_space<vmem>>, %arg2: memref<25x48xf32, #tpu.memory_space<vmem>>, %arg3: memref<16x57xf32, #tpu.memory_space<vmem>>, %arg4: memref<32x32xf32, #tpu.memory_space<vmem>>, %arg5: memref<8x32xf32, #tpu.memory_space<vmem>>, %arg6: memref<1x137xf32, #tpu.memory_space<vmem>>, %arg7: memref<8x16xf32, #tpu.memory_space<vmem>>, %arg8: memref<16x25xf32, #tpu.memory_space<vmem>>) attributes {dimension_semantics = [], scalar_prefetch = 0 : i64, scratch_operands = 0 : i64, tpu.core_type = #tpu.core_type<tc>} {
    %c0 = arith.constant 0 : index
    %c0_0 = arith.constant 0 : index
    %0 = vector.load %arg0[%c0, %c0_0] : memref<8x25xf32, #tpu.memory_space<vmem>>, vector<8x25xf32>
    %c0_1 = arith.constant 0 : index
    %c0_2 = arith.constant 0 : index
    %1 = vector.load %arg6[%c0_1, %c0_2] : memref<1x137xf32, #tpu.memory_space<vmem>>, vector<1x137xf32>
    %2 = vector.extract_strided_slice %1 {offsets = [0, 0], sizes = [1, 48], strides = [1, 1]} : vector<1x137xf32> to vector<1x48xf32>
    %3 = vector.extract_strided_slice %1 {offsets = [0, 48], sizes = [1, 32], strides = [1, 1]} : vector<1x137xf32> to vector<1x32xf32>
    %4 = vector.extract_strided_slice %1 {offsets = [0, 80], sizes = [1, 16], strides = [1, 1]} : vector<1x137xf32> to vector<1x16xf32>
    %5 = vector.extract_strided_slice %1 {offsets = [0, 96], sizes = [1, 16], strides = [1, 1]} : vector<1x137xf32> to vector<1x16xf32>
    %6 = vector.extract_strided_slice %1 {offsets = [0, 112], sizes = [1, 25], strides = [1, 1]} : vector<1x137xf32> to vector<1x25xf32>
    %c0_3 = arith.constant 0 : index
    %c0_4 = arith.constant 0 : index
    %7 = vector.load %arg2[%c0_3, %c0_4] : memref<25x48xf32, #tpu.memory_space<vmem>>, vector<25x48xf32>
    %cst = arith.constant dense<0.000000e+00> : vector<8x48xf32>
    %8 = tpu.matmul %0, %7, %cst {dimension_numbers = #tpu.dot_dimension_numbers<[1], [0], [0], [1], [0, 0, 1, 1], [], []>} : vector<8x25xf32>, vector<25x48xf32>, vector<8x48xf32> -> vector<8x48xf32>
    %9 = vector.broadcast %2 : vector<1x48xf32> to vector<8x48xf32>
    %10 = arith.addf %8, %9 : vector<8x48xf32>
    %11 = vector.extract_strided_slice %10 {offsets = [0, 0], sizes = [8, 16], strides = [1, 1]} : vector<8x48xf32> to vector<8x16xf32>
    %cst_5 = arith.constant 0.000000e+00 : f32
    %12 = vector.broadcast %cst_5 : f32 to vector<8x16xf32>
    %13 = arith.maximumf %11, %12 : vector<8x16xf32>
    %14 = vector.extract_strided_slice %10 {offsets = [0, 16], sizes = [8, 32], strides = [1, 1]} : vector<8x48xf32> to vector<8x32xf32>
    %c0_6 = arith.constant 0 : index
    %c0_7 = arith.constant 0 : index
    %15 = vector.load %arg3[%c0_6, %c0_7] : memref<16x57xf32, #tpu.memory_space<vmem>>, vector<16x57xf32>
    %16 = vector.extract_strided_slice %15 {offsets = [0, 0], sizes = [16, 32], strides = [1, 1]} : vector<16x57xf32> to vector<16x32xf32>
    %cst_8 = arith.constant dense<0.000000e+00> : vector<8x32xf32>
    %17 = tpu.matmul %13, %16, %cst_8 {dimension_numbers = #tpu.dot_dimension_numbers<[1], [0], [0], [1], [0, 0, 1, 1], [], []>} : vector<8x16xf32>, vector<16x32xf32>, vector<8x32xf32> -> vector<8x32xf32>
    %18 = vector.broadcast %3 : vector<1x32xf32> to vector<8x32xf32>
    %19 = arith.addf %17, %18 : vector<8x32xf32>
    %cst_9 = arith.constant 0.000000e+00 : f32
    %20 = vector.broadcast %cst_9 : f32 to vector<8x32xf32>
    %21 = arith.maximumf %19, %20 : vector<8x32xf32>
    %c0_10 = arith.constant 0 : index
    %c0_11 = arith.constant 0 : index
    %22 = vector.load %arg4[%c0_10, %c0_11] : memref<32x32xf32, #tpu.memory_space<vmem>>, vector<32x32xf32>
    %23 = vector.extract_strided_slice %22 {offsets = [0, 0], sizes = [32, 16], strides = [1, 1]} : vector<32x32xf32> to vector<32x16xf32>
    %cst_12 = arith.constant dense<0.000000e+00> : vector<8x16xf32>
    %24 = tpu.matmul %21, %23, %cst_12 {dimension_numbers = #tpu.dot_dimension_numbers<[1], [0], [0], [1], [0, 0, 1, 1], [], []>} : vector<8x32xf32>, vector<32x16xf32>, vector<8x16xf32> -> vector<8x16xf32>
    %25 = vector.broadcast %4 : vector<1x16xf32> to vector<8x16xf32>
    %26 = arith.addf %24, %25 : vector<8x16xf32>
    %c0_13 = arith.constant 0 : index
    %c0_14 = arith.constant 0 : index
    %27 = vector.load %arg7[%c0_13, %c0_14] : memref<8x16xf32, #tpu.memory_space<vmem>>, vector<8x16xf32>
    tpu.vector_store %arg7[%c0_13, %c0_14], %26 {strides = array<i32>} : memref<8x16xf32, #tpu.memory_space<vmem>>, vector<8x16xf32>,
    %28 = vector.extract_strided_slice %26 {offsets = [0, 0], sizes = [8, 8], strides = [1, 1]} : vector<8x16xf32> to vector<8x8xf32>
    %29 = vector.extract_strided_slice %26 {offsets = [0, 8], sizes = [8, 8], strides = [1, 1]} : vector<8x16xf32> to vector<8x8xf32>
    %cst_15 = arith.constant 5.000000e-01 : f32
    %30 = vector.broadcast %cst_15 : f32 to vector<8x8xf32>
    %31 = arith.mulf %30, %29 : vector<8x8xf32>
    %32 = math.exp %31 : vector<8x8xf32>
    %c0_16 = arith.constant 0 : index
    %c0_17 = arith.constant 0 : index
    %33 = vector.load %arg1[%c0_16, %c0_17] : memref<16x8xf32, #tpu.memory_space<vmem>>, vector<16x8xf32>
    %34 = tpu.concatenate %28, %28 in 0 : vector<8x8xf32>, vector<8x8xf32> -> vector<16x8xf32>
    %35 = tpu.concatenate %32, %32 in 0 : vector<8x8xf32>, vector<8x8xf32> -> vector<16x8xf32>
    %36 = tpu.concatenate %14, %14 in 0 : vector<8x32xf32>, vector<8x32xf32> -> vector<16x32xf32>
    %37 = arith.mulf %33, %35 : vector<16x8xf32>
    %38 = arith.addf %34, %37 : vector<16x8xf32>
    %c0_18 = arith.constant 0 : index
    %c0_19 = arith.constant 0 : index
    %39 = vector.load %arg5[%c0_18, %c0_19] : memref<8x32xf32, #tpu.memory_space<vmem>>, vector<8x32xf32>
    %cst_20 = arith.constant dense<0.000000e+00> : vector<16x32xf32>
    %40 = tpu.matmul %38, %39, %cst_20 {dimension_numbers = #tpu.dot_dimension_numbers<[1], [0], [0], [1], [0, 0, 1, 1], [], []>} : vector<16x8xf32>, vector<8x32xf32>, vector<16x32xf32> -> vector<16x32xf32>
    %41 = arith.addf %40, %36 : vector<16x32xf32>
    %cst_21 = arith.constant 0.000000e+00 : f32
    %42 = vector.broadcast %cst_21 : f32 to vector<16x32xf32>
    %43 = arith.maximumf %41, %42 : vector<16x32xf32>
    %44 = vector.extract_strided_slice %22 {offsets = [0, 16], sizes = [32, 16], strides = [1, 1]} : vector<32x32xf32> to vector<32x16xf32>
    %cst_22 = arith.constant dense<0.000000e+00> : vector<16x16xf32>
    %45 = tpu.matmul %43, %44, %cst_22 {dimension_numbers = #tpu.dot_dimension_numbers<[1], [0], [0], [1], [0, 0, 1, 1], [], []>} : vector<16x32xf32>, vector<32x16xf32>, vector<16x16xf32> -> vector<16x16xf32>
    %46 = vector.broadcast %5 : vector<1x16xf32> to vector<16x16xf32>
    %47 = arith.addf %45, %46 : vector<16x16xf32>
    %cst_23 = arith.constant 0.000000e+00 : f32
    %48 = vector.broadcast %cst_23 : f32 to vector<16x16xf32>
    %49 = arith.maximumf %47, %48 : vector<16x16xf32>
    %50 = vector.extract_strided_slice %15 {offsets = [0, 32], sizes = [16, 25], strides = [1, 1]} : vector<16x57xf32> to vector<16x25xf32>
    %cst_24 = arith.constant dense<0.000000e+00> : vector<16x25xf32>
    %51 = tpu.matmul %49, %50, %cst_24 {dimension_numbers = #tpu.dot_dimension_numbers<[1], [0], [0], [1], [0, 0, 1, 1], [], []>} : vector<16x16xf32>, vector<16x25xf32>, vector<16x25xf32> -> vector<16x25xf32>
    %52 = vector.broadcast %6 : vector<1x25xf32> to vector<16x25xf32>
    %53 = arith.addf %51, %52 : vector<16x25xf32>
    %c0_25 = arith.constant 0 : index
    %c0_26 = arith.constant 0 : index
    %54 = vector.load %arg8[%c0_25, %c0_26] : memref<16x25xf32, #tpu.memory_space<vmem>>, vector<16x25xf32>
    tpu.vector_store %arg8[%c0_25, %c0_26], %53 {strides = array<i32>} : memref<16x25xf32, #tpu.memory_space<vmem>>, vector<16x25xf32>,
    return
  }
}

</mosaic_0001>

<bundles_post_ra>
// kernel: bbvae_forward.1
= control target key start
LH: loop header
LB: loop body
LE: loop exit
PB: predicated region body
PF: predicated region fallthrough
CT: control target
= control target key end

     0   :  { %14 = vsyncpa [#allocation3], 0  ;;  %s1031_s0 = inlined_call_operand.hbm [shape: f32[8,25], index: 0, kind: input, shape index: {}]   ;;  %s1032_s1 = inlined_call_operand.vmem [shape: f32[16,8], index: 1, kind: input, shape index: {}]   ;;  %s1033_s2 = inlined_call_operand.vmem [shape: f32[25,48], index: 2, kind: input, shape index: {}]   ;;  %s1034_s3 = inlined_call_operand.hbm [shape: f32[16,57], index: 3, kind: input, shape index: {}]   ;;  %s1035_s4 = inlined_call_operand.vmem [shape: f32[32,32], index: 4, kind: input, shape index: {}]   ;;  %s1036_s5 = inlined_call_operand.hbm [shape: f32[8,32], index: 5, kind: input, shape index: {}]   ;;  %s1037_s6 = inlined_call_operand.vmem [shape: f32[1,137], index: 6, kind: input, shape index: {}]   ;;  %s1038_s7 = inlined_call_operand.vmem [shape: f32[8,16], index: 7, kind: output, shape index: {0}]   ;;  %s1039_s8 = inlined_call_operand.vmem [shape: f32[16,25], index: 8, kind: output, shape index: {1}]  }
   0x1   :  { %15 = vsyncpa [#allocation5], 0  ;;  %s852_s27 = smov [#allocation4]   ;;  %s782_s9 = scalar_lea.hbm %s1034_s3, 256 }
   0x2   :  { %s35_s28 = sshll.u32 %s852_s27, 4  ;;  %p783_p0 = scmp.ne.s32.totalorder %s1034_s3, %s782_s9  ;;  %s36_s28 = int_to_ptr.vmem [resolvable:$true] %s35_s28 }
   0x3   :  { %p786_p1 = scmp.lt.u32.totalorder %s782_s9, %s1034_s3 }
   0x5   :  { %p788_p2 = pnand %p786_p1, %p783_p0 }
   0x7   :  { %791 = shalt.err (!%p788_p2)
}
   0x8   :  { %s792_s14 = scalar_lea.vmem %s36_s28, 256  ;;  %p797_p4 = scmp.lt.s32.totalorder %s36_s28, %s36_s28 }
   0x9   :  { %p793_p3 = scmp.ne.s32.totalorder %s36_s28, %s792_s14  ;;  %p798_p5 = scmp.lt.s32.totalorder %s792_s14, %s792_s14 }
   0xb   :  { %p799_p6 = por %p798_p5, %p797_p4 }
   0xd   :  { %p800_p7 = pnand %p799_p6, %p793_p3 }
   0xf   :  { %803 = shalt.err (!%p800_p7)
}
  0x10   :  { %s853_s15 = smov 128   ;;  %s854_s16 = smov 8  }
  0x11   :  { %41 = dma.hbm_to_vmem [thread:$0]  %s1034_s3, 256, %s36_s28, [#allocation5], %s853_s15, %s853_s15, %s854_s16  }
  0x12   :  { %s855_s19 = smov [#allocation2]   ;;  %s856_s21 = smov [#allocation6]  }
  0x13   :  { %s22_s20 = sshll.u32 %s855_s19, 4  ;;  %s50_s22 = sshll.u32 %s856_s21, 4  ;;  %s23_s20 = int_to_ptr.vmem [resolvable:$true] %s22_s20  ;;  %s51_s22 = int_to_ptr.vmem [resolvable:$true] %s50_s22 }
  0x14   :  { %s804_s25 = scalar_lea.hbm %s1031_s0, 128 }
  0x15   :  { %p805_p8 = scmp.ne.s32.totalorder %s1031_s0, %s804_s25  ;;  %p808_p9 = scmp.lt.u32.totalorder %s804_s25, %s1031_s0 }
  0x17   :  { %p810_p10 = pnand %p808_p9, %p805_p8 }
  0x19   :  { %813 = shalt.err (!%p810_p10)
}
  0x1a   :  { %s814_s3 = scalar_lea.vmem %s23_s20, 128  ;;  %p819_p12 = scmp.lt.s32.totalorder %s23_s20, %s23_s20 }
  0x1b   :  { %p815_p11 = scmp.ne.s32.totalorder %s23_s20, %s814_s3  ;;  %p820_p13 = scmp.lt.s32.totalorder %s814_s3, %s814_s3 }
  0x1d   :  { %p821_p0 = por %p820_p13, %p819_p12 }
  0x1f   :  { %p822_p1 = pnand %p821_p0, %p815_p11 }
  0x21   :  { %825 = shalt.err (!%p822_p1)
}
  0x22   :  { %25 = dma.hbm_to_vmem [thread:$0]  %s1031_s0, 128, %s23_s20, [#allocation3]  }
  0x23   :  { %s826_s12 = scalar_lea.hbm %s1036_s5, 128 }
  0x24   :  { %p827_p2 = scmp.ne.s32.totalorder %s1036_s5, %s826_s12  ;;  %p830_p3 = scmp.lt.u32.totalorder %s826_s12, %s1036_s5 }
  0x26   :  { %p832_p4 = pnand %p830_p3, %p827_p2 }
  0x28   :  { %835 = shalt.err (!%p832_p4)
}
  0x29   :  { %s836_s17 = scalar_lea.vmem %s51_s22, 128  ;;  %p841_p6 = scmp.lt.s32.totalorder %s51_s22, %s51_s22 }
  0x2a   :  { %p837_p5 = scmp.ne.s32.totalorder %s51_s22, %s836_s17  ;;  %p842_p7 = scmp.lt.s32.totalorder %s836_s17, %s836_s17 }
  0x2c   :  { %p843_p8 = por %p842_p7, %p841_p6 }
  0x2e   :  { %p844_p9 = pnand %p843_p8, %p837_p5 }
  0x30   :  { %847 = shalt.err (!%p844_p9)
}
  0x31   :  { %53 = dma.hbm_to_vmem [thread:$0]  %s1036_s5, 128, %s51_s22, [#allocation5]  }
  0x32   :  { %848 = dma.done.wait [#allocation3], 128  }
  0x33   :  { %849 = vsyncadd [#allocation3], 4294967168 }
  0x34   :  { %850 = dma.done.wait [#allocation5], 384  }
  0x35   :  { %851 = vsyncadd [#allocation5], 4294966912  ;;  %v857_v0 = vmov 0.0|0.0   ;;  %vm858_vm0 = vmmov 0   ;;  %v859_v1 = vmov 0.0   ;;  %v67_v2 = vld [vmem:[%s1033_s2] sm:$0xff]  ;;  %v72_v9 = vlaneseq }
  0x36   :  { %721 = vmatprep.subr.bf16.mxu0 %v857_v0  ;;  %728 = vmatprep.subr.bf16.mxu1 %v857_v0  ;;  %v68_v3 = vld [vmem:[%s1033_s2 + $0x8] sm:$0xff]  ;;  %v69_v4 = vld [vmem:[%s1033_s2 + $0x10] sm:$0xff]  ;;  %v70_v6 = vld [vmem:[%s1033_s2 + $0x18] sm:$0x1]  ;;  %vm81_vm1 = vcmask 1040384   ;;  %vm860_vm2 = vmmov 1  }
  0x37   :  { %677 = vmatprep.mubr.msk.f32.mxu0 %vm858_vm0, %v859_v1  ;;  %684 = vmatprep.mubr.msk.f32.mxu1 %vm858_vm0, %v859_v1  ;;  %v722_v5 = vpack.c.bf16 %v68_v3, %v67_v2  ;;  %v725_v7 = vpack.c.bf16 %v70_v6, %v69_v4  ;;  %vm726_vm3 = vmpackc.low %vm81_vm1, %vm860_vm2  ;;  %v65_v8 = vld [vmem:[#allocation2] sm:$0xff]  ;;  %vm77_vm4 = vcmask 203776   ;;  %v964_v10 = vshrl.u32 %v72_v9, 7  ;;  %v966_v11 = vld [vmem:[#allocation4] sm:$0xff]  ;;  %s861_s27 = smov 80   ;;  %s862_s12 = smov 48  }
  0x38   :  { %v968_v12 = vld [vmem:[#allocation4 + $0x8] sm:$0xff]  ;;  %v976_v15 = vld [vmem:[%s1037_s6] sm:$0x3]  ;;  %v237_v19 = vld [vmem:[%s1035_s4 + $0x8] sm:$0xff]  ;;  %vm161_vm5 = vcmask 130048   ;;  %vm243_vm6 = vcmask 261120  }
  0x39   :  { %723 = vmatpush3.bf16.msra.mxu0 %v722_v5  ;;  %v74_v13 = vsub.s32 0, %v964_v10  ;;  %v729_v14 = vpack.c.bf16 %v968_v12, %v966_v11  ;;  %v775_v16 = vpack.i.bf16 %v968_v12, %v966_v11  ;;  %v236_v18 = vld [vmem:[%s1035_s4] sm:$0xff]  ;;  %v238_v25 = vld [vmem:[%s1035_s4 + $0x10] sm:$0xff]  ;;  %v239_v26 = vld [vmem:[%s1035_s4 + $0x18] sm:$0xff]  ;;  %s863_s14 = smov 112   ;;  %s864_s15 = smov 120  }
  0x3a   :  { %724 = vmatprep.subr.bf16.mxu0 %v857_v0  ;;  %v732_v23 = vpack.c.bf16 %v237_v19, %v236_v18  ;;  %v735_v27 = vpack.c.bf16 %v239_v26, %v238_v25  ;;  %v331_v39 = vld [vmem:[#allocation6] sm:$0xff]  ;;  %v770_v40 = vpack.i.bf16 %v239_v26, %v238_v25  ;;  %v765_v42 = vpack.i.bf16 %v237_v19, %v236_v18  ;;  %v321_v43 = vld [vmem:[%s1032_s1] sm:$0xff]  ;;  %v322_v44 = vld [vmem:[%s1032_s1 + $0x8] sm:$0xff]  ;;  %s865_s1 = smov 96   ;;  %s866_s18 = smov 32  }
  0x3b   :  { %730 = vmatpush3.bf16.msra.mxu1 %v729_v14  ;;  %v981_v17 = vrot.slane %v976_v15, %v74_v13  ;;  %vm336_vm7 = vcmask 64512   ;;  %v524_v5 = vsub.s32 1, %v964_v10  ;;  %s867_s19 = smov 16  }
  0x3c   :  { %731 = vmatprep.subr.bf16.mxu1 %v857_v0 }
  0x3d   :  { %727 = vmatpush3.bf16.msk.msra.mxu0 %vm726_vm3, %v725_v7  ;;  %158 = vrot.lane.b32.xlu0 %v981_v17, %s861_s27  ;;  %v525_v6 = vrot.slane %v976_v15, %v524_v5 }
  0x3e   :  { %698 = vmatprep.subr.mxu0 %v331_v39 }
  0x40   :  { %678 = vmatmul.mubr.msk.f32.vlgmr.msra.gmra.mrb[0].mxu0 %vm77_vm4, %v65_v8 }
  0x41   :  { %240 = vrot.lane.b32.xlu0 %v981_v17, %s862_s12  ;;  %699 = vmatpush3.msra.mxu0 %v331_v39 }
  0x45   :  { %771 = vrot.lane.b32.xlu0 %v770_v40, %s863_s14 }
  0x49   :  { %776 = vrot.lane.b32.xlu0 %v775_v16, %s865_s1 }
  0x4d   :  { %534 = vrot.lane.b32.xlu0 %v981_v17, %s867_s19 }
  0xaf   :  { %v159_v28 = vpop.permute.xlu0 %158 }
  0xb3   :  { %v241_v33 = vpop.permute.xlu0 %240 }
  0xb7   :  { %v772_v46 = vpop.permute.xlu0 %771 }
  0xb8   :  { %v774_v51 = vunpack.i.h.bf16 %v772_v46  ;;  %v773_v52 = vunpack.i.l.bf16 %v772_v46 }
  0xba   :  { %v741_v57 = vpack.c.bf16 %v774_v51, %v773_v52 }
  0xbb   :  { %v777_v58 = vpop.permute.xlu0 %776 }
  0xbc   :  { %v779_v59 = vunpack.i.h.bf16 %v777_v58  ;;  %v778_v60 = vunpack.i.l.bf16 %v777_v58 }
  0xbe   :  { %v745_v61 = vpack.c.bf16 %v779_v59, %v778_v60 }
  0xbf   :  { %v535_v16 = vpop.permute.xlu0 %534 }
 0x113   :  { %v151_v20 = vpop.f32.mrb[0].mxu0 }
 0x114   :  { %v152_v21 = vadd.f32 %v151_v20, %v981_v17  ;;  %v679_v22 = vpop.f32.mrb[1].mxu0 }
 0x116   :  { %v155_v24 = vmax.f32 %v152_v21, 0.0 }
 0x118   :  { %685 = vmatmul.mubr.msk.f32.vlgmr.msra.gmra.mrb[0].mxu1 %vm161_vm5, %v155_v24 }
 0x119   :  { %733 = vmatpush3.bf16.msra.mxu1 %v732_v23  ;;  %695 = vmatprep.mubr.msk.f32.mxu1 %vm858_vm0, %v859_v1 }
 0x11a   :  { %734 = vmatprep.subr.bf16.mxu1 %v857_v0 }
 0x11d   :  { %736 = vmatpush3.bf16.msra.mxu1 %v735_v27 }
 0x11e   :  { %746 = vmatprep.subr.bf16.mxu1 %v745_v61 }
 0x1eb   :  { %v231_v29 = vpop.f32.mrb[0].mxu1 }
 0x1ec   :  { %v232_v30 = vadd.f32 %v231_v29, %v159_v28  ;;  %v686_v31 = vpop.f32.mrb[1].mxu1 }
 0x1ee   :  { %v235_v32 = vmax.f32 %v232_v30, 0.0 }
 0x1f0   :  { %696 = vmatmul.mubr.msk.f32.vlgmr.msra.gmra.mrb[2].mxu1 %vm243_vm6, %v235_v32 }
 0x1f1   :  { %748 = vmatpush3.bf16.msra.mxu1 %v745_v61 }
 0x2c3   :  { %v313_v34 = vpop.f32.mrb[2].mxu1 }
 0x2c4   :  { %v314_v35 = vadd.f32 %v313_v34, %v241_v33  ;;  %v697_v36 = vpop.f32.mrb[3].mxu1 }
 0x2c6   :  { %317 = vst.msk [vmem:[%s1038_s7] sm:$0xff] %vm161_vm5, %v314_v35  ;;  %v318_v37 = vmul.f32 0.5, %v314_v35 }
 0x2c8   :  { %v319_v38 = vmul.f32 1.442695, %v318_v37 }
 0x2ca   :  { %780 = vpow2.f32 %v319_v38 }
 0x2d4   :  { %v781_v41 = vpop.eup %780 }
 0x2d5   :  { %324 = vrot.lane.b32.xlu1 %v781_v41, %s864_s15 }
 0x2d9   :  { %766 = vrot.lane.b32.xlu1 %v765_v42, %s863_s14 }
 0x2dd   :  { %333 = vrot.lane.b32.xlu1 %v152_v21, %s863_s14 }
 0x2e1   :  { %436 = vrot.lane.b32.xlu1 %v981_v17, %s866_s18 }
 0x2e5   :  { %536 = vrot.lane.b32.xlu1 %v525_v6, %s867_s19 }
 0x347   :  { %v325_v45 = vpop.permute.xlu1 %324 }
 0x348   :  { %v327_v47 = vmul.f32 %v325_v45, %v321_v43  ;;  %v328_v48 = vmul.f32 %v325_v45, %v322_v44 }
 0x34a   :  { %v329_v49 = vadd.f32 %v327_v47, %v314_v35  ;;  %v330_v50 = vadd.f32 %v328_v48, %v314_v35 }
 0x34b   :  { %v767_v53 = vpop.permute.xlu1 %766 }
 0x34c   :  { %v769_v54 = vunpack.i.h.bf16 %v767_v53  ;;  %v768_v55 = vunpack.i.l.bf16 %v767_v53  ;;  %700 = vmatprep.mubr.msk.f32.mxu0 %vm336_vm7, %v329_v49 }
 0x34d   :  { %701 = vmatmul.mubr.msk.f32.vlgmr.msra.gmra.mrb[2].mxu0 %vm336_vm7, %v330_v50 }
 0x34e   :  { %v737_v56 = vpack.c.bf16 %v769_v54, %v768_v55 }
 0x34f   :  { %v334_v62 = vpop.permute.xlu1 %333 }
 0x350   :  { %738 = vmatprep.subr.bf16.mxu0 %v737_v56 }
 0x351   :  { %740 = vmatpush3.bf16.msra.mxu0 %v737_v56 }
 0x352   :  { %742 = vmatprep.subr.bf16.mxu0 %v741_v57 }
 0x353   :  { %v437_v7 = vpop.permute.xlu1 %436 }
 0x355   :  { %744 = vmatpush3.bf16.msra.mxu0 %v741_v57 }
 0x357   :  { %v537_v18 = vpop.permute.xlu1 %536 }
 0x358   :  { %v538_v10 = vsel %vm161_vm5, %v535_v16, %v537_v18 }
 0x420   :  { %v702_v63 = vpop.f32.mrb[2].mxu0 }
 0x421   :  { %v415_v0 = vadd.f32 %v702_v63, %v334_v62  ;;  %v409_v1 = vpop.f32.mrb[3].mxu0 }
 0x422   :  { %v410_v2 = vadd.f32 %v409_v1, %v334_v62 }
 0x423   :  { %v419_v4 = vmax.f32 %v415_v0, 0.0 }
 0x424   :  { %v418_v3 = vmax.f32 %v410_v2, 0.0 }
 0x426   :  { %711 = vmatprep.mubr.msk.f32.mxu0 %vm243_vm6, %v418_v3 }
 0x427   :  { %712 = vmatmul.mubr.msk.f32.vlgmr.msra.gmra.mrb[4].mxu0 %vm243_vm6, %v419_v4 }
 0x4fa   :  { %v713_v8 = vpop.f32.mrb[4].mxu0 }
 0x4fb   :  { %v517_v9 = vadd.f32 %v713_v8, %v437_v7  ;;  %v511_v11 = vpop.f32.mrb[5].mxu0 }
 0x4fc   :  { %v512_v12 = vadd.f32 %v511_v11, %v437_v7 }
 0x4fd   :  { %v521_v14 = vmax.f32 %v517_v9, 0.0 }
 0x4fe   :  { %v520_v13 = vmax.f32 %v512_v12, 0.0 }
 0x500   :  { %718 = vmatprep.mubr.msk.f32.mxu1 %vm161_vm5, %v520_v13 }
 0x501   :  { %719 = vmatmul.mubr.msk.f32.vlgmr.msra.gmra.mrb[4].mxu1 %vm161_vm5, %v521_v14 }
 0x5d4   :  { %v720_v19 = vpop.f32.mrb[4].mxu1 }
 0x5d5   :  { %v618_v17 = vadd.f32 %v720_v19, %v538_v10  ;;  %v612_v20 = vpop.f32.mrb[5].mxu1 }
 0x5d6   :  { %v613_v15 = vadd.f32 %v612_v20, %v538_v10 }
 0x5d7   :  { %622 = vst.msk [vmem:[%s1039_s8 + $0x8] sm:$0xff] %vm77_vm4, %v618_v17 }
 0x5d8   :  { %621 = vst.msk [vmem:[%s1039_s8] sm:$0xff] %vm77_vm4, %v613_v15 }
 0x5d9   :  { %631 = vsyncpa [#allocation3], 1 }
 0x5da   :  { %632 = vsyncpa [#allocation5], 1 }

</bundles_post_ra>
